<compile_context>
chip_gen: v5e
topology: v5e:2x2
jax: 0.10.0
libtpu: 0.0.40
codegen_flags: <defaults>
</compile_context>

<pallas_src>
import functools

import jax
import jax.numpy as jnp
from jax import lax
from jax.experimental import pallas as pl
from jax.experimental.pallas import tpu as pltpu


def _round_up(x, n):
    return ((x + n - 1) // n) * n


def _raceface_kernel(s, emb_ref, w_ref, label_ref, scosd_ref, ssind_ref,
                     out_ref):
    """Computes one (tm, tn) output tile.

    emb_ref:   (tm, D)  pre-normalized embeddings (matmul dtype)
    w_ref:     (D, tn)  pre-normalized weight tile (matmul dtype)
    label_ref: (tm, 1)  int32 target class (-1 => no margin)
    scosd_ref: (tm, 1)  f32 s * cos(m * prob)
    ssind_ref: (tm, 1)  f32 s * sin(m * prob)
    out_ref:   (tm, tn) f32
    """
    # MXU matmul with f32 accumulation. Both operands are already L2
    # normalized in the wrapper, so the result is cos(theta) directly.
    cos = jnp.dot(emb_ref[...], w_ref[...], preferred_element_type=jnp.float32)
    cos = jnp.clip(cos, -1.0, 1.0)

    # sin(theta); the clamp guarantees 1 - cos^2 >= 0 under round-to-nearest.
    sin = jnp.sqrt(1.0 - cos * cos)

    tm, tn = out_ref.shape
    # Global class index of each column in this tile (class tiles are the
    # OUTER grid axis -> program_id(0)).
    col = lax.broadcasted_iota(jnp.int32, (tm, tn), 1) + pl.program_id(0) * tn
    is_target = col == label_ref[...]

    # cos(theta + d) = cos*cos(d) - sin*sin(d); only at the target column.
    # label == -1 matches no column index (>= 0) => no margin, as in torch.
    out_ref[...] = jnp.where(
        is_target,
        cos * scosd_ref[...] - sin * ssind_ref[...],
        cos * jnp.float32(s))


def raceface_forward(embeddings, kernel, label, prob, s=64.0, m=0.5,
                     matmul_dtype=jnp.bfloat16, tm=None, tn=None):
    """Pallas TPU implementation of RaceFace.forward.

    embeddings: (B, in_features) f32
    kernel:     (in_features, out_features) f32
    label:      (B,) int32 (-1 => no margin for that row)
    prob:       (B,) f32
    matmul_dtype: dtype the matmul operands are streamed/computed in
                  (bf16 default: MXU-native and halves weight HBM traffic;
                   pass jnp.float32 for bit-for-bit-tight validation)
    returns:    (B, out_features) f32
    """
    B, D = embeddings.shape
    D2, C = kernel.shape
    assert D == D2

    esize = jnp.dtype(matmul_dtype).itemsize
    # Sublane packing multiple for the matmul dtype: 8 rows for f32,
    # 16 for bf16, 32 for int8/fp8 — keeps the LHS vreg packing clean.
    sub = 8 * max(1, 4 // esize)

    # ---- tile selection --------------------------------------------------
    if tm is None:
        tm = min(_round_up(B, sub), 256)
    else:
        tm = _round_up(tm, sub)

    if tn is None:
        c128 = _round_up(C, 128)
        if c128 <= 2048:
            tn = c128                       # single class tile, no padding
        else:
            # Prefer a large tile that divides the 128-padded class count so
            # the output needs no extra padding (and no trailing slice-copy).
            tn = 2048
            for cand in range(2048, 1024 - 1, -128):
                if c128 % cand == 0:
                    tn = cand
                    break
    else:
        tn = _round_up(tn, 128)

    def _vmem_bytes(tm_, tn_):
        # Double-buffered emb / weight / out tiles + per-row scalar streams.
        return 2 * (tm_ * D * esize + D * tn_ * esize + tm_ * tn_ * 4
                    + 3 * tm_ * 4)

    budget = 20 * 1024 * 1024   # keep well inside scoped VMEM on all gens
    while _vmem_bytes(tm, tn) > budget and tn > 256:
        tn = max(256, _round_up(tn // 2, 128))
    while _vmem_bytes(tm, tn) > budget and tm > sub:
        tm = max(sub, _round_up(tm // 2, sub))

    Bp = _round_up(B, tm)
    Cp = _round_up(C, tn)
    pad_b = Bp - B
    pad_c = Cp - C

    # ---- fused wrapper-side preprocessing --------------------------------
    emb = embeddings.astype(jnp.float32)
    # Row-normalize and cast in one fused pass. Like the PyTorch reference, a
    # zero-norm row/column yields inf/NaN (no eps added).
    emb_c = (emb * lax.rsqrt(jnp.sum(emb * emb, axis=1, keepdims=True))
             ).astype(matmul_dtype)

    wf = kernel.astype(jnp.float32)
    inv_wnorm = lax.rsqrt(jnp.sum(wf * wf, axis=0, keepdims=True))   # (1, C)
    # Column-normalize BEFORE padding (padded columns stay exactly zero),
    # scale + cast in one fused pass; the f32 weight copy is never padded.
    w_c = (wf * inv_wnorm).astype(matmul_dtype)

    # Per-row margin angle d = m * prob, with s folded in; only consumed at
    # the target column.
    delta = (jnp.float32(m) * prob.astype(jnp.float32)).reshape(B, 1)
    scosd = jnp.float32(s) * jnp.cos(delta)
    ssind = jnp.float32(s) * jnp.sin(delta)
    label2d = label.astype(jnp.int32).reshape(B, 1)

    if pad_b:
        emb_c = jnp.pad(emb_c, ((0, pad_b), (0, 0)))
        scosd = jnp.pad(scosd, ((0, pad_b), (0, 0)))
        ssind = jnp.pad(ssind, ((0, pad_b), (0, 0)))
        label2d = jnp.pad(label2d, ((0, pad_b), (0, 0)), constant_values=-1)
    if pad_c:
        w_c = jnp.pad(w_c, ((0, 0), (0, pad_c)))

    # ---- pallas call ------------------------------------------------------
    # Class tiles are the OUTER grid axis: the weight block index depends
    # only on j, so each (D, tn) weight tile is DMA'd exactly once; only the
    # small embedding tile is re-fetched per class tile.
    grid = (Cp // tn, Bp // tm)
    out = pl.pallas_call(
        functools.partial(_raceface_kernel, float(s)),
        out_shape=jax.ShapeDtypeStruct((Bp, Cp), jnp.float32),
        grid=grid,
        in_specs=[
            pl.BlockSpec((tm, D), lambda j, i: (i, 0)),   # emb (normalized)
            pl.BlockSpec((D, tn), lambda j, i: (0, j)),   # weight (normalized)
            pl.BlockSpec((tm, 1), lambda j, i: (i, 0)),   # label
            pl.BlockSpec((tm, 1), lambda j, i: (i, 0)),   # s*cos(d)
            pl.BlockSpec((tm, 1), lambda j, i: (i, 0)),   # s*sin(d)
        ],
        out_specs=pl.BlockSpec((tm, tn), lambda j, i: (i, j)),
        compiler_params=pltpu.CompilerParams(
            dimension_semantics=("parallel", "parallel"),
            vmem_limit_bytes=32 * 1024 * 1024),
    )(emb_c, w_c, label2d, scosd, ssind)

    if pad_b or pad_c:
        out = out[:B, :C]
    return out


def raceface_reference(embeddings, kernel, label, prob, s=64.0, m=0.5):
    """Pure-JAX reference mirroring the PyTorch code."""
    emb_n = embeddings / jnp.linalg.norm(embeddings, axis=1, keepdims=True)
    ker_n = kernel / jnp.linalg.norm(kernel, axis=0, keepdims=True)
    cos_theta = jnp.clip(emb_n @ ker_n, -1.0, 1.0)
    theta = jnp.arccos(cos_theta)
    B, C = cos_theta.shape
    col = jnp.arange(C)[None, :]
    m_hot = jnp.where((col == label[:, None]) & (label[:, None] != -1),
                      m * prob[:, None], 0.0)
    return jnp.cos(theta + m_hot) * s


if __name__ == "__main__":
    key = jax.random.PRNGKey(0)
    k_emb, k_ker, k_lab, k_prob = jax.random.split(key, 4)

    batch, in_features, out_features = 8, 32, 128
    s, m = 64.0, 0.5

    embeddings = jax.random.normal(k_emb, (batch, in_features), dtype=jnp.float32)
    # nn.init.normal_(kernel, std=0.01) — deterministic synthetic init.
    kernel = 0.01 * jax.random.normal(k_ker, (in_features, out_features),
                                      dtype=jnp.float32)
    label = jax.random.randint(k_lab, (batch,), 0, out_features, dtype=jnp.int32)
    label = label.at[0].set(-1)   # exercise the "label == -1 -> no margin" path
    prob = jax.random.uniform(k_prob, (batch,), dtype=jnp.float32)

    ref = raceface_reference(embeddings, kernel, label, prob, s=s, m=m)

    # Exact f32-operand path: tight tolerance against the reference.
    out_f32 = jax.block_until_ready(
        raceface_forward(embeddings, kernel, label, prob, s=s, m=m,
                         matmul_dtype=jnp.float32))
    assert out_f32.shape == (batch, out_features)
    assert jnp.allclose(out_f32, ref, rtol=1e-4, atol=1e-4)

    # Default bf16-streamed path (halves weight HBM bytes; deliberate,
    # documented precision tradeoff) checked at a bf16-appropriate tolerance.
    out_bf16 = jax.block_until_ready(
        raceface_forward(embeddings, kernel, label, prob, s=s, m=m))
    assert out_bf16.shape == (batch, out_features)
    assert jnp.allclose(out_bf16, ref, rtol=3e-2, atol=3e-1)

    print("KERNEL_OK")
</pallas_src>

<mosaic_0001>
module attributes {stable_mosaic.version = 11 : i64} {
  func.func @_raceface_kernel(%arg0: i32, %arg1: i32, %arg2: memref<8x32xf32, #tpu.memory_space<vmem>>, %arg3: memref<32x128xf32, #tpu.memory_space<vmem>>, %arg4: memref<8x1xi32, #tpu.memory_space<vmem>>, %arg5: memref<8x1xf32, #tpu.memory_space<vmem>>, %arg6: memref<8x1xf32, #tpu.memory_space<vmem>>, %arg7: memref<8x128xf32, #tpu.memory_space<vmem>>) attributes {dimension_semantics = [#tpu.dimension_semantics<parallel>, #tpu.dimension_semantics<parallel>], iteration_bounds = array<i64: 1, 1>, scalar_prefetch = 0 : i64, scratch_operands = 0 : i64, tpu.core_type = #tpu.core_type<tc>, window_params = [{transform_indices = @transform_0, window_bounds = array<i64: 8, 32>}, {transform_indices = @transform_1, window_bounds = array<i64: 32, 128>}, {transform_indices = @transform_2, window_bounds = array<i64: 8, 1>}, {transform_indices = @transform_3, window_bounds = array<i64: 8, 1>}, {transform_indices = @transform_4, window_bounds = array<i64: 8, 1>}, {transform_indices = @transform_5, window_bounds = array<i64: 8, 128>}]} {
    %c0 = arith.constant 0 : index
    %c0_0 = arith.constant 0 : index
    %0 = vector.load %arg2[%c0, %c0_0] : memref<8x32xf32, #tpu.memory_space<vmem>>, vector<8x32xf32>
    %c0_1 = arith.constant 0 : index
    %c0_2 = arith.constant 0 : index
    %1 = vector.load %arg3[%c0_1, %c0_2] : memref<32x128xf32, #tpu.memory_space<vmem>>, vector<32x128xf32>
    %cst = arith.constant dense<0.000000e+00> : vector<8x128xf32>
    %2 = tpu.matmul %0, %1, %cst {dimension_numbers = #tpu.dot_dimension_numbers<[1], [0], [0], [1], [0, 0, 1, 1], [], []>} : vector<8x32xf32>, vector<32x128xf32>, vector<8x128xf32> -> vector<8x128xf32>
    %cst_3 = arith.constant -1.000000e+00 : f32
    %cst_4 = arith.constant 1.000000e+00 : f32
    %3 = vector.broadcast %cst_3 : f32 to vector<8x128xf32>
    %4 = arith.maximumf %3, %2 : vector<8x128xf32>
    %5 = vector.broadcast %cst_4 : f32 to vector<8x128xf32>
    %6 = arith.minimumf %5, %4 : vector<8x128xf32>
    %7 = arith.mulf %6, %6 : vector<8x128xf32>
    %cst_5 = arith.constant 1.000000e+00 : f32
    %8 = vector.broadcast %cst_5 : f32 to vector<8x128xf32>
    %9 = arith.subf %8, %7 : vector<8x128xf32>
    %10 = math.sqrt %9 : vector<8x128xf32>
    %11 = tpu.iota {dimensions = array<i32: 1>} : vector<8x128xi32>
    %c128_i32 = arith.constant 128 : i32
    %12 = arith.muli %arg0, %c128_i32 : i32
    %13 = vector.broadcast %12 : i32 to vector<8x128xi32>
    %14 = arith.addi %11, %13 : vector<8x128xi32>
    %c0_6 = arith.constant 0 : index
    %c0_7 = arith.constant 0 : index
    %15 = vector.load %arg4[%c0_6, %c0_7] : memref<8x1xi32, #tpu.memory_space<vmem>>, vector<8x1xi32>
    %16 = vector.broadcast %15 : vector<8x1xi32> to vector<8x128xi32>
    %17 = arith.cmpi eq, %14, %16 : vector<8x128xi32>
    %c0_8 = arith.constant 0 : index
    %c0_9 = arith.constant 0 : index
    %18 = vector.load %arg5[%c0_8, %c0_9] : memref<8x1xf32, #tpu.memory_space<vmem>>, vector<8x1xf32>
    %19 = vector.broadcast %18 : vector<8x1xf32> to vector<8x128xf32>
    %20 = arith.mulf %6, %19 : vector<8x128xf32>
    %c0_10 = arith.constant 0 : index
    %c0_11 = arith.constant 0 : index
    %21 = vector.load %arg6[%c0_10, %c0_11] : memref<8x1xf32, #tpu.memory_space<vmem>>, vector<8x1xf32>
    %22 = vector.broadcast %21 : vector<8x1xf32> to vector<8x128xf32>
    %23 = arith.mulf %10, %22 : vector<8x128xf32>
    %24 = arith.subf %20, %23 : vector<8x128xf32>
    %cst_12 = arith.constant 6.400000e+01 : f32
    %25 = vector.broadcast %cst_12 : f32 to vector<8x128xf32>
    %26 = arith.mulf %6, %25 : vector<8x128xf32>
    %27 = arith.select %17, %24, %26 : vector<8x128xi1>, vector<8x128xf32>
    %c0_13 = arith.constant 0 : index
    %c0_14 = arith.constant 0 : index
    %28 = vector.load %arg7[%c0_13, %c0_14] : memref<8x128xf32, #tpu.memory_space<vmem>>, vector<8x128xf32>
    tpu.vector_store %arg7[%c0_13, %c0_14], %27 {strides = array<i32>} : memref<8x128xf32, #tpu.memory_space<vmem>>, vector<8x128xf32>,
    return
  }
  func.func @transform_0(%arg0: i32, %arg1: i32) -> (i32, i32) {
    %c0_i32 = arith.constant 0 : i32
    %c0_i32_0 = arith.constant 0 : i32
    return %arg1, %c0_i32 : i32, i32
  }
  func.func @transform_1(%arg0: i32, %arg1: i32) -> (i32, i32) {
    %c0_i32 = arith.constant 0 : i32
    %c0_i32_0 = arith.constant 0 : i32
    return %c0_i32, %arg0 : i32, i32
  }
  func.func @transform_2(%arg0: i32, %arg1: i32) -> (i32, i32) {
    %c0_i32 = arith.constant 0 : i32
    %c0_i32_0 = arith.constant 0 : i32
    return %arg1, %c0_i32 : i32, i32
  }
  func.func @transform_3(%arg0: i32, %arg1: i32) -> (i32, i32) {
    %c0_i32 = arith.constant 0 : i32
    %c0_i32_0 = arith.constant 0 : i32
    return %arg1, %c0_i32 : i32, i32
  }
  func.func @transform_4(%arg0: i32, %arg1: i32) -> (i32, i32) {
    %c0_i32 = arith.constant 0 : i32
    %c0_i32_0 = arith.constant 0 : i32
    return %arg1, %c0_i32 : i32, i32
  }
  func.func @transform_5(%arg0: i32, %arg1: i32) -> (i32, i32) {
    %c0_i32 = arith.constant 0 : i32
    return %arg1, %arg0 : i32, i32
  }
}

</mosaic_0001>

<bundles_post_ra>
// kernel: tpu_custom_call.1
= control target key start
LH: loop header
LB: loop body
LE: loop exit
PB: predicated region body
PF: predicated region fallthrough
CT: control target
= control target key end

     0   :  { %10 = vsyncpa [#allocation3], 0  ;;  %s243_s0 = inlined_call_operand.vmem [shape: f32[8,32], index: 0, kind: input, shape index: {}]   ;;  %s244_s1 = inlined_call_operand.hbm [shape: f32[32,128], index: 1, kind: input, shape index: {}]   ;;  %s245_s2 = inlined_call_operand.vmem [shape: s32[8,1], index: 2, kind: input, shape index: {}]   ;;  %s246_s3 = inlined_call_operand.vmem [shape: f32[8,1], index: 3, kind: input, shape index: {}]   ;;  %s247_s4 = inlined_call_operand.vmem [shape: f32[8,1], index: 4, kind: input, shape index: {}]   ;;  %s248_s5 = inlined_call_operand.hbm [shape: f32[8,128], index: 5, kind: output, shape index: {}]  }
   0x1   :  { %11 = vsyncpa [#allocation4], 0  ;;  %s18_s20 = sshll.u32 %s244_s1, 4  ;;  %s190_s21 = smov [#allocation2]   ;;  %s19_s20 = int_to_ptr.hbm [resolvable:$true] %s18_s20 }
   0x2   :  { %s20_s22 = sshll.u32 %s190_s21, 4  ;;  %s191_s23 = smov 128   ;;  %s21_s22 = int_to_ptr.vmem [resolvable:$true] %s20_s22 }
   0x3   :  { %s192_s24 = smov 8  }
   0x4   :  { %26 = dma.hbm_to_vmem [thread:$0]  %s19_s20, 512, %s21_s22, [#allocation3], %s191_s23, %s191_s23, %s192_s24  }
   0x5   :  { %186 = dma.done.wait [#allocation3], 512  }
   0x6   :  { %187 = vsyncadd [#allocation3], 4294966784  ;;  %v193_v0 = vmov 0   ;;  %v41_v1 = vld [vmem:[#allocation2 + $0x18] sm:$0xff]  ;;  %v40_v2 = vld [vmem:[#allocation2 + $0x10] sm:$0xff]  ;;  %vm42_vm0 = vcmask 261120   ;;  %v82_v19 = vlaneseq }
   0x7   :  { %134 = vset.pattern.permute.xlu0 %v193_v0  ;;  %135 = vset.pattern.permute.xlu1 %v193_v0  ;;  %v92_v3 = vld [vmem:[%s246_s3] sm:$0xff]  ;;  %v39_v4 = vld [vmem:[#allocation2 + $0x8] sm:$0xff]  ;;  %s117_s7 = sshll.u32 %s248_s5, 4  ;;  %s118_s7 = int_to_ptr.hbm [resolvable:$true] %s117_s7 }
   0x8   :  { %58 = vmatpush.msra.mxu0 %v41_v1  ;;  %95 = vperm.xlu0 %134, %v92_v3   ;;  %v87_v5 = vld [vmem:[%s245_s2] sm:$0xff]  ;;  %v83_v23 = vand.u32 127, %v82_v19 }
   0x9   :  { %89 = vperm.xlu1 %135, %v87_v5   ;;  %v38_v6 = vld [vmem:[#allocation2] sm:$0xff] }
   0xa   :  { %59 = vmatpush.msra.mxu0 %v40_v2  ;;  %v37_v7 = vld [vmem:[%s243_s0] sm:$0xff]  ;;  %s194_s0 = smov [#allocation5]  }
   0xb   :  { %v99_v8 = vld [vmem:[%s247_s4] sm:$0xff]  ;;  %s115_s2 = sshll.u32 %s194_s0, 4  ;;  %s116_s2 = int_to_ptr.vmem [resolvable:$true] %s115_s2 }
   0xc   :  { %60 = vmatpush.msra.mxu0 %v39_v4 }
   0xe   :  { %61 = vmatpush.msra.mxu0 %v38_v6 }
   0xf   :  { %127 = vmatmul.msk.f32.vlgmr.msra.gmra.mxu0 %vm42_vm0, %v37_v7 }
  0x10   :  { %102 = vperm.xlu0 %134, %v99_v8  }
  0x7a   :  { %v96_v17 = vpop.permute.xlu0 %95 }
  0x7b   :  { %v90_v25 = vpop.permute.xlu1 %89 }
  0x7c   :  { %vm91_vm3 = vcmp.eq.s32.totalorder %v83_v23, %v90_v25 }
  0x82   :  { %v103_v26 = vpop.permute.xlu0 %102 }
  0x8c   :  { %v63_v9 = vpop.f32.mrf.mxu0 }
  0x8d   :  { %v128_v10 = vclamps-f32 %v63_v9, 1.0 }
  0x8f   :  { %v68_v11 = vmul.f32 %v128_v10, %v128_v10  ;;  %v98_v28 = vmul.f32 %v128_v10, %v96_v17  ;;  %v107_v30 = vmul.f32 64.0, %v128_v10 }
  0x91   :  { %v69_v12 = vsub.f32 1.0, %v68_v11 }
  0x93   :  { %136 = vrsqrt.f32 %v69_v12  ;;  %vm77_vm1 = vcmp.eq.f32.partialorder %v69_v12, inf  ;;  %v80_v22 = vand.u32 2147483648, %v69_v12  ;;  %vm79_vm2 = vcmp.eq.f32.partialorder %v69_v12, 0.0 }
  0x99   :  { %v137_v13 = vpop.eup %136 }
  0x9a   :  { %v71_v14 = vmul.f32 %v137_v13, %v69_v12 }
  0x9c   :  { %v72_v15 = vmul.f32 %v137_v13, %v71_v14 }
  0x9e   :  { %v73_v16 = vmul.f32 0.5, %v72_v15 }
  0xa0   :  { %v74_v18 = vsub.f32 1.5, %v73_v16 }
  0xa2   :  { %v75_v20 = vmul.f32 %v137_v13, %v74_v18 }
  0xa4   :  { %v76_v21 = vmul.f32 %v75_v20, %v69_v12 }
  0xa6   :  { %v78_v24 = vsel %vm77_vm1, %v69_v12, %v76_v21 }
  0xa7   :  { %v81_v27 = vsel %vm79_vm2, %v80_v22, %v78_v24 }
  0xa8   :  { %v105_v29 = vmul.f32 %v103_v26, %v81_v27 }
  0xaa   :  { %v106_v31 = vsub.f32 %v98_v28, %v105_v29 }
  0xac   :  { %v108_v32 = vsel %vm91_vm3, %v106_v31, %v107_v30 }
  0xad   :  { %109 = vst [vmem:[#allocation5] sm:$0xff] %v108_v32 }
  0xae   :  { %120 = dma.vmem_to_hbm [thread:$0]  %s116_s2, 128, %s118_s7, [#allocation4]  }
  0xaf   :  { %188 = dma.done.wait [#allocation4], 128  }
  0xb0   :  { %189 = vsyncadd [#allocation4], 4294967168 }
  0xb1   :  { %125 = vsyncpa [#allocation3], 1 }
  0xb2   :  { %126 = vsyncpa [#allocation4], 1 }

</bundles_post_ra>
